<compile_context>
chip_gen: v7x
topology: tpu7x:2x2x1
jax: 0.10.0
libtpu: 0.0.40
codegen_flags: <defaults>
</compile_context>

<pallas_src>
from functools import partial

import numpy as np
import jax
import jax.numpy as jnp
from jax.experimental import pallas as pl
from jax.experimental.pallas import tpu as pltpu

MULTI = ("seq", "open", "loop")
CHANNEL1 = 32
CONV_K = 8          # Conv1d kernel size
POOL_K = 5          # MaxPool1d kernel size
POOL_S = 4          # MaxPool1d stride (== number of conv-output phases)
CIN_PAD = 8         # per-phase channel padding (6 real input channels -> 8 sublanes)
LN_EPS = 1e-5


def _make_ids(multi):
    dct = {"seq": 4, "open": 1, "loop": 1}
    ids, last = {}, 0
    for omic in multi:
        ids[omic] = (last, last + dct[omic])
        last += dct[omic]
    return ids, last


# --------------------------------- kernel ---------------------------------- #
def encoder1_kernel(x_ref, w64_ref, bconv_ref, gamma_ref, beta_ref,
                    wproj_ref, bproj_ref, out_ref, *, tl, groups):
    """Fused Conv1d(k=8)+ReLU+MaxPool(5,4)+LayerNorm (all branches) + Conv1d(k=1)+ReLU.

    x_ref block: (1, 1, 32, tl+2), row 8*r + c == input channel c at phase r, i.e.
    x[c, 4*(P0 + q) + r] for q = 0..tl+1 (P0 = this tile's first pooled output).
    Channels live on sublanes, pooled positions on lanes, so the NCL output block
    (1, 32, tl) is stored directly and lane-dense for tl >= 128.
    """
    xw = x_ref[0, 0]                                            # (32, tl+2) f32

    # Stack the three phase-column shifts on sublanes:
    #   xs[32*a + 8*r + c, p] = x[c, 4*(P0+p) + (4a+r)]  ->  row 8*s + c, s = 0..11.
    xs = jnp.concatenate(
        [xw[:, 0:tl], xw[:, 1:tl + 1], xw[:, 2:tl + 2]], axis=0)        # (96, tl)

    # Phase-decomposed conv + pool:
    #   conv[4P + d] = W64 @ xs[8d : 8d+64]   (same (32,64) tap weight for every d)
    #   pool[P]      = max_{d=0..4} conv[4P + d]
    w64 = w64_ref[...]                                          # (32, 64)
    pooled = jnp.dot(w64, xs[0:CIN_PAD * CONV_K],
                     preferred_element_type=jnp.float32)        # (32, tl)
    for d in range(1, POOL_K):
        o = CIN_PAD * d
        pooled = jnp.maximum(
            pooled,
            jnp.dot(w64, xs[o:o + CIN_PAD * CONV_K],
                    preferred_element_type=jnp.float32))

    # Conv bias + ReLU after the max (bias is per-channel constant, ReLU monotone).
    act = jnp.maximum(pooled + bconv_ref[...], 0.0)             # (32, tl)

    gam = gamma_ref[...]                                        # (32, 1)
    bet = beta_ref[...]                                         # (32, 1)

    # Per-branch LayerNorm over that branch's channels (sublane reductions, f32
    # stats), re-assembled into one (32, tl) value (8-aligned sublane offsets) so
    # the final 1x1 conv is a single fused (32,32)@(32,tl) matmul.
    parts = []
    for o1, o2 in groups:
        inv_c = 1.0 / (o2 - o1)
        blk = act[o1:o2]                                        # (Cg, tl)
        mean = jnp.sum(blk, axis=0, keepdims=True) * inv_c      # (1, tl)
        cent = blk - mean
        var = jnp.sum(cent * cent, axis=0, keepdims=True) * inv_c
        parts.append(cent * jax.lax.rsqrt(var + LN_EPS) * gam[o1:o2] + bet[o1:o2])
    normed = parts[0] if len(parts) == 1 else jnp.concatenate(parts, axis=0)

    # Final 1x1 Conv1d + bias + ReLU; write NCL directly (32 sublanes, tl lanes).
    out_ref[0] = jnp.maximum(
        jnp.dot(wproj_ref[...], normed, preferred_element_type=jnp.float32)
        + bproj_ref[...], 0.0)


# ------------------------------ param packing ------------------------------ #
def _pack_params(params, multi):
    """Pack per-branch weights into one block-diagonal, K-stacked tap weight."""
    ids, cin_tot = _make_ids(multi)
    assert cin_tot <= CIN_PAD
    cat_c = int(sum(params[m]["w"].shape[0] for m in multi))

    wbd = jnp.zeros((cat_c, cin_tot, CONV_K), jnp.float32)   # block-diag (out,in,k)
    bconv = jnp.zeros((cat_c, 1), jnp.float32)
    gamma = jnp.zeros((cat_c, 1), jnp.float32)
    beta = jnp.zeros((cat_c, 1), jnp.float32)
    groups, o = [], 0
    for m in multi:
        p = params[m]
        co = p["w"].shape[0]
        i1, i2 = ids[m]
        wbd = wbd.at[o:o + co, i1:i2, :].set(p["w"].astype(jnp.float32))
        bconv = bconv.at[o:o + co, 0].set(p["b"])
        gamma = gamma.at[o:o + co, 0].set(p["gamma"])
        beta = beta.at[o:o + co, 0].set(p["beta"])
        groups.append((o, o + co))
        o += co

    # K-stacked tap weight: column 8*j + c  <-  w[:, c, j]  (cols 8j+6, 8j+7 zero).
    w64 = jnp.zeros((cat_c, CIN_PAD * CONV_K), jnp.float32)
    for j in range(CONV_K):
        w64 = w64.at[:, CIN_PAD * j:CIN_PAD * j + cin_tot].set(wbd[:, :, j])

    wproj = params["proj"]["w"][:, :, 0].astype(jnp.float32)    # (C1, C)
    bproj = params["proj"]["b"][:, None].astype(jnp.float32)    # (C1, 1)
    return w64, bconv, gamma, beta, wproj, bproj, tuple(groups), cat_c, cin_tot


# ------------------------------ forward wrapper ----------------------------- #
def encoder1_forward(x0, params, multi=MULTI, tile_l=512):
    """x0: (B, 6, L) NCL float32 -> (B, channel1, L_out) NCL float32 (eval mode)."""
    (w64, bconv, gamma, beta, wproj, bproj,
     groups, cat_c, cin_tot) = _pack_params(params, multi)
    bsz, cin_x, length = x0.shape
    assert cin_x == cin_tot
    l_out = (length - CONV_K + 1 - POOL_K) // POOL_S + 1
    assert l_out >= 1

    # L tiling: one tile for small inputs; otherwise 128-aligned tiles, aiming for
    # >= 4 L-tiles on large inputs (v7x megacore + pipeline warm-up).
    if l_out <= 256:
        tl = l_out
    else:
        tl_cap = max(128, (tile_l // 128) * 128)
        quarter = -(-l_out // 4)
        tl = min(tl_cap, -(-quarter // 128) * 128)
    nlt = -(-l_out // tl)
    tin_w = tl + 2                      # phase columns per tile (incl. 2-col halo)

    # Wrapper-side phase split + per-tile windowing (cheap XLA data prep).
    # Row layout of the windowed input: 8*phase + channel (channels padded 6 -> 8).
    lp = POOL_S * (nlt * tl + 2)        # input positions the tiles may touch
    if lp > length:
        x_use = jnp.pad(x0, ((0, 0), (0, 0), (0, lp - length)))
    else:
        x_use = x0[:, :, :lp]
    lq = lp // POOL_S                   # = nlt*tl + 2 phase columns
    xq = x_use.reshape(bsz, cin_x, lq, POOL_S)                  # [b, c, q, r]
    xq = jnp.transpose(xq, (0, 3, 1, 2))                        # [b, r, c, q]
    xq = jnp.pad(xq, ((0, 0), (0, 0), (0, CIN_PAD - cin_x), (0, 0)))
    xq = xq.reshape(bsz, POOL_S * CIN_PAD, lq)                  # (B, 32, lq)
    x_win = jnp.stack([xq[:, :, l * tl:l * tl + tin_w] for l in range(nlt)],
                      axis=1)                                   # (B, nlt, 32, tin_w)

    rows = POOL_S * CIN_PAD             # 32 sublanes of phase-split input
    c1 = wproj.shape[0]

    out = pl.pallas_call(
        partial(encoder1_kernel, tl=tl, groups=groups),
        out_shape=jax.ShapeDtypeStruct((bsz, c1, nlt * tl), jnp.float32),
        grid=(bsz, nlt),
        in_specs=[
            pl.BlockSpec((1, 1, rows, tin_w), lambda b, l: (b, l, 0, 0)),
            pl.BlockSpec((cat_c, CIN_PAD * CONV_K), lambda b, l: (0, 0)),
            pl.BlockSpec((cat_c, 1), lambda b, l: (0, 0)),
            pl.BlockSpec((cat_c, 1), lambda b, l: (0, 0)),
            pl.BlockSpec((cat_c, 1), lambda b, l: (0, 0)),
            pl.BlockSpec((c1, cat_c), lambda b, l: (0, 0)),
            pl.BlockSpec((c1, 1), lambda b, l: (0, 0)),
        ],
        out_specs=pl.BlockSpec((1, c1, tl), lambda b, l: (b, 0, l)),
        compiler_params=pltpu.CompilerParams(
            dimension_semantics=("parallel", "parallel")),
    )(x_win, w64, bconv, gamma, beta, wproj, bproj)
    return out[:, :, :l_out]


# ----------------------------- parameter init ------------------------------- #
def init_params(key, multi=MULTI, channel1=CHANNEL1):
    sub = channel1 // (len(multi) + 1) if "seq" in multi else channel1 // len(multi)
    specs = {"seq": (4, 2 * sub), "open": (1, sub), "loop": (1, sub)}
    keys = jax.random.split(key, 4 * len(multi) + 2)
    ki = 0
    params = {}
    for name in multi:
        cin, cout = specs[name]
        params[name] = dict(
            w=0.1 * jax.random.normal(keys[ki], (cout, cin, CONV_K), jnp.float32),
            b=0.1 * jax.random.normal(keys[ki + 1], (cout,), jnp.float32),
            gamma=1.0 + 0.1 * jax.random.normal(keys[ki + 2], (cout,), jnp.float32),
            beta=0.1 * jax.random.normal(keys[ki + 3], (cout,), jnp.float32),
        )
        ki += 4
    params["proj"] = dict(
        w=0.1 * jax.random.normal(keys[ki], (channel1, channel1, 1), jnp.float32),
        b=0.1 * jax.random.normal(keys[ki + 1], (channel1,), jnp.float32),
    )
    return params


# ----------------------------- pure-JAX reference --------------------------- #
def ref_forward(x0, params, multi=MULTI):
    ids, _ = _make_ids(multi)
    outs = []
    for name in multi:
        i1, i2 = ids[name]
        xs = x0[:, i1:i2, :]
        p = params[name]
        y = jax.lax.conv_general_dilated(
            xs, p["w"], (1,), "VALID", dimension_numbers=("NCH", "OIH", "NCH"))
        y = jnp.maximum(y + p["b"][None, :, None], 0.0)
        y = jax.lax.reduce_window(y, -jnp.inf, jax.lax.max,
                                  (1, 1, POOL_K), (1, 1, POOL_S), "VALID")
        yt = jnp.transpose(y, (0, 2, 1))
        mean = jnp.mean(yt, axis=-1, keepdims=True)
        var = jnp.mean(jnp.square(yt - mean), axis=-1, keepdims=True)
        yt = (yt - mean) * jax.lax.rsqrt(var + LN_EPS) * p["gamma"] + p["beta"]
        outs.append(jnp.transpose(yt, (0, 2, 1)))
    cat = jnp.concatenate(outs, axis=1)                          # (B, C1, L_out)
    wp = params["proj"]["w"][:, :, 0]
    y = jnp.einsum("oi,bil->bol", wp, cat) + params["proj"]["b"][None, :, None]
    return jnp.maximum(y, 0.0)


if __name__ == "__main__":
    key = jax.random.PRNGKey(0)
    kx, kp = jax.random.split(key)
    params = init_params(kp)

    # Case 1: single small tile (L=64 -> l_out=14; masked-store smoke path).
    B, L = 2, 64
    x0 = jax.random.normal(kx, (B, 6, L), jnp.float32)
    out = jax.block_until_ready(encoder1_forward(x0, params))    # (2, 32, 14)
    np.testing.assert_allclose(np.asarray(out), np.asarray(ref_forward(x0, params)),
                               rtol=1e-4, atol=1e-4)

    # Case 2: multi-tile lane-dense path (L=2056 -> l_out=512 -> 4 L-tiles of 128).
    kx2 = jax.random.split(kx)[0]
    B2, L2 = 2, 2056
    x1 = jax.random.normal(kx2, (B2, 6, L2), jnp.float32)
    out1 = jax.block_until_ready(encoder1_forward(x1, params))   # (2, 32, 512)
    np.testing.assert_allclose(np.asarray(out1), np.asarray(ref_forward(x1, params)),
                               rtol=1e-4, atol=1e-4)

    print("KERNEL_OK")
</pallas_src>

<mosaic_0001>
module attributes {stable_mosaic.version = 11 : i64} {
  func.func @encoder1_kernel(%arg0: i32, %arg1: i32, %arg2: memref<1x1x32x16xf32, #tpu.memory_space<vmem>>, %arg3: memref<32x64xf32, #tpu.memory_space<vmem>>, %arg4: memref<32x1xf32, #tpu.memory_space<vmem>>, %arg5: memref<32x1xf32, #tpu.memory_space<vmem>>, %arg6: memref<32x1xf32, #tpu.memory_space<vmem>>, %arg7: memref<32x32xf32, #tpu.memory_space<vmem>>, %arg8: memref<32x1xf32, #tpu.memory_space<vmem>>, %arg9: memref<1x32x14xf32, #tpu.memory_space<vmem>>) attributes {dimension_semantics = [#tpu.dimension_semantics<parallel>, #tpu.dimension_semantics<parallel>], iteration_bounds = array<i64: 2, 1>, scalar_prefetch = 0 : i64, scratch_operands = 0 : i64, tpu.core_type = #tpu.core_type<tc>, window_params = [{transform_indices = @transform_0, window_bounds = array<i64: 1, 1, 32, 16>}, {pipeline_mode = #tpu.pipeline_mode<synchronous>, transform_indices = @transform_1, window_bounds = array<i64: 32, 64>}, {pipeline_mode = #tpu.pipeline_mode<synchronous>, transform_indices = @transform_2, window_bounds = array<i64: 32, 1>}, {pipeline_mode = #tpu.pipeline_mode<synchronous>, transform_indices = @transform_3, window_bounds = array<i64: 32, 1>}, {pipeline_mode = #tpu.pipeline_mode<synchronous>, transform_indices = @transform_4, window_bounds = array<i64: 32, 1>}, {pipeline_mode = #tpu.pipeline_mode<synchronous>, transform_indices = @transform_5, window_bounds = array<i64: 32, 32>}, {pipeline_mode = #tpu.pipeline_mode<synchronous>, transform_indices = @transform_6, window_bounds = array<i64: 32, 1>}, {transform_indices = @transform_7, window_bounds = array<i64: 1, 32, 14>}]} {
    %c0 = arith.constant 0 : index
    %c0_0 = arith.constant 0 : index
    %c0_1 = arith.constant 0 : index
    %c0_2 = arith.constant 0 : index
    %0 = vector.load %arg2[%c0, %c0_0, %c0_1, %c0_2] : memref<1x1x32x16xf32, #tpu.memory_space<vmem>>, vector<1x1x32x16xf32>
    %1 = vector.shape_cast %0 : vector<1x1x32x16xf32> to vector<32x16xf32>
    %2 = vector.extract_strided_slice %1 {offsets = [0, 0], sizes = [32, 14], strides = [1, 1]} : vector<32x16xf32> to vector<32x14xf32>
    %3 = vector.extract_strided_slice %1 {offsets = [0, 1], sizes = [32, 14], strides = [1, 1]} : vector<32x16xf32> to vector<32x14xf32>
    %4 = vector.extract_strided_slice %1 {offsets = [0, 2], sizes = [32, 14], strides = [1, 1]} : vector<32x16xf32> to vector<32x14xf32>
    %5 = tpu.concatenate %2, %3, %4 in 0 : vector<32x14xf32>, vector<32x14xf32>, vector<32x14xf32> -> vector<96x14xf32>
    %c0_3 = arith.constant 0 : index
    %c0_4 = arith.constant 0 : index
    %6 = vector.load %arg3[%c0_3, %c0_4] : memref<32x64xf32, #tpu.memory_space<vmem>>, vector<32x64xf32>
    %7 = vector.extract_strided_slice %5 {offsets = [0, 0], sizes = [64, 14], strides = [1, 1]} : vector<96x14xf32> to vector<64x14xf32>
    %cst = arith.constant dense<0.000000e+00> : vector<32x14xf32>
    %8 = tpu.matmul %6, %7, %cst {dimension_numbers = #tpu.dot_dimension_numbers<[1], [0], [0], [1], [0, 0, 1, 1], [], []>} : vector<32x64xf32>, vector<64x14xf32>, vector<32x14xf32> -> vector<32x14xf32>
    %9 = vector.extract_strided_slice %5 {offsets = [8, 0], sizes = [64, 14], strides = [1, 1]} : vector<96x14xf32> to vector<64x14xf32>
    %cst_5 = arith.constant dense<0.000000e+00> : vector<32x14xf32>
    %10 = tpu.matmul %6, %9, %cst_5 {dimension_numbers = #tpu.dot_dimension_numbers<[1], [0], [0], [1], [0, 0, 1, 1], [], []>} : vector<32x64xf32>, vector<64x14xf32>, vector<32x14xf32> -> vector<32x14xf32>
    %11 = arith.maximumf %8, %10 : vector<32x14xf32>
    %12 = vector.extract_strided_slice %5 {offsets = [16, 0], sizes = [64, 14], strides = [1, 1]} : vector<96x14xf32> to vector<64x14xf32>
    %cst_6 = arith.constant dense<0.000000e+00> : vector<32x14xf32>
    %13 = tpu.matmul %6, %12, %cst_6 {dimension_numbers = #tpu.dot_dimension_numbers<[1], [0], [0], [1], [0, 0, 1, 1], [], []>} : vector<32x64xf32>, vector<64x14xf32>, vector<32x14xf32> -> vector<32x14xf32>
    %14 = arith.maximumf %11, %13 : vector<32x14xf32>
    %15 = vector.extract_strided_slice %5 {offsets = [24, 0], sizes = [64, 14], strides = [1, 1]} : vector<96x14xf32> to vector<64x14xf32>
    %cst_7 = arith.constant dense<0.000000e+00> : vector<32x14xf32>
    %16 = tpu.matmul %6, %15, %cst_7 {dimension_numbers = #tpu.dot_dimension_numbers<[1], [0], [0], [1], [0, 0, 1, 1], [], []>} : vector<32x64xf32>, vector<64x14xf32>, vector<32x14xf32> -> vector<32x14xf32>
    %17 = arith.maximumf %14, %16 : vector<32x14xf32>
    %18 = vector.extract_strided_slice %5 {offsets = [32, 0], sizes = [64, 14], strides = [1, 1]} : vector<96x14xf32> to vector<64x14xf32>
    %cst_8 = arith.constant dense<0.000000e+00> : vector<32x14xf32>
    %19 = tpu.matmul %6, %18, %cst_8 {dimension_numbers = #tpu.dot_dimension_numbers<[1], [0], [0], [1], [0, 0, 1, 1], [], []>} : vector<32x64xf32>, vector<64x14xf32>, vector<32x14xf32> -> vector<32x14xf32>
    %20 = arith.maximumf %17, %19 : vector<32x14xf32>
    %c0_9 = arith.constant 0 : index
    %c0_10 = arith.constant 0 : index
    %21 = vector.load %arg4[%c0_9, %c0_10] : memref<32x1xf32, #tpu.memory_space<vmem>>, vector<32x1xf32>
    %22 = vector.broadcast %21 : vector<32x1xf32> to vector<32x14xf32>
    %23 = arith.addf %20, %22 : vector<32x14xf32>
    %cst_11 = arith.constant 0.000000e+00 : f32
    %24 = vector.broadcast %cst_11 : f32 to vector<32x14xf32>
    %25 = arith.maximumf %23, %24 : vector<32x14xf32>
    %c0_12 = arith.constant 0 : index
    %c0_13 = arith.constant 0 : index
    %26 = vector.load %arg5[%c0_12, %c0_13] : memref<32x1xf32, #tpu.memory_space<vmem>>, vector<32x1xf32>
    %c0_14 = arith.constant 0 : index
    %c0_15 = arith.constant 0 : index
    %27 = vector.load %arg6[%c0_14, %c0_15] : memref<32x1xf32, #tpu.memory_space<vmem>>, vector<32x1xf32>
    %28 = vector.extract_strided_slice %25 {offsets = [0, 0], sizes = [16, 14], strides = [1, 1]} : vector<32x14xf32> to vector<16x14xf32>
    %cst_16 = arith.constant dense<0.000000e+00> : vector<14xf32>
    %29 = vector.multi_reduction <add>, %28, %cst_16 [0] : vector<16x14xf32> to vector<14xf32>
    %30 = vector.shape_cast %29 : vector<14xf32> to vector<1x14xf32>
    %cst_17 = arith.constant 6.250000e-02 : f32
    %31 = vector.broadcast %cst_17 : f32 to vector<1x14xf32>
    %32 = arith.mulf %30, %31 : vector<1x14xf32>
    %33 = vector.broadcast %32 : vector<1x14xf32> to vector<16x14xf32>
    %34 = arith.subf %28, %33 : vector<16x14xf32>
    %35 = arith.mulf %34, %34 : vector<16x14xf32>
    %cst_18 = arith.constant dense<0.000000e+00> : vector<14xf32>
    %36 = vector.multi_reduction <add>, %35, %cst_18 [0] : vector<16x14xf32> to vector<14xf32>
    %37 = vector.shape_cast %36 : vector<14xf32> to vector<1x14xf32>
    %cst_19 = arith.constant 6.250000e-02 : f32
    %38 = vector.broadcast %cst_19 : f32 to vector<1x14xf32>
    %39 = arith.mulf %37, %38 : vector<1x14xf32>
    %cst_20 = arith.constant 9.99999974E-6 : f32
    %40 = vector.broadcast %cst_20 : f32 to vector<1x14xf32>
    %41 = arith.addf %39, %40 : vector<1x14xf32>
    %42 = math.rsqrt %41 : vector<1x14xf32>
    %43 = vector.broadcast %42 : vector<1x14xf32> to vector<16x14xf32>
    %44 = arith.mulf %34, %43 : vector<16x14xf32>
    %45 = vector.extract_strided_slice %26 {offsets = [0, 0], sizes = [16, 1], strides = [1, 1]} : vector<32x1xf32> to vector<16x1xf32>
    %46 = vector.broadcast %45 : vector<16x1xf32> to vector<16x14xf32>
    %47 = arith.mulf %44, %46 : vector<16x14xf32>
    %48 = vector.extract_strided_slice %27 {offsets = [0, 0], sizes = [16, 1], strides = [1, 1]} : vector<32x1xf32> to vector<16x1xf32>
    %49 = vector.broadcast %48 : vector<16x1xf32> to vector<16x14xf32>
    %50 = arith.addf %47, %49 : vector<16x14xf32>
    %51 = vector.extract_strided_slice %25 {offsets = [16, 0], sizes = [8, 14], strides = [1, 1]} : vector<32x14xf32> to vector<8x14xf32>
    %cst_21 = arith.constant dense<0.000000e+00> : vector<14xf32>
    %52 = vector.multi_reduction <add>, %51, %cst_21 [0] : vector<8x14xf32> to vector<14xf32>
    %53 = vector.shape_cast %52 : vector<14xf32> to vector<1x14xf32>
    %cst_22 = arith.constant 1.250000e-01 : f32
    %54 = vector.broadcast %cst_22 : f32 to vector<1x14xf32>
    %55 = arith.mulf %53, %54 : vector<1x14xf32>
    %56 = vector.broadcast %55 : vector<1x14xf32> to vector<8x14xf32>
    %57 = arith.subf %51, %56 : vector<8x14xf32>
    %58 = arith.mulf %57, %57 : vector<8x14xf32>
    %cst_23 = arith.constant dense<0.000000e+00> : vector<14xf32>
    %59 = vector.multi_reduction <add>, %58, %cst_23 [0] : vector<8x14xf32> to vector<14xf32>
    %60 = vector.shape_cast %59 : vector<14xf32> to vector<1x14xf32>
    %cst_24 = arith.constant 1.250000e-01 : f32
    %61 = vector.broadcast %cst_24 : f32 to vector<1x14xf32>
    %62 = arith.mulf %60, %61 : vector<1x14xf32>
    %cst_25 = arith.constant 9.99999974E-6 : f32
    %63 = vector.broadcast %cst_25 : f32 to vector<1x14xf32>
    %64 = arith.addf %62, %63 : vector<1x14xf32>
    %65 = math.rsqrt %64 : vector<1x14xf32>
    %66 = vector.broadcast %65 : vector<1x14xf32> to vector<8x14xf32>
    %67 = arith.mulf %57, %66 : vector<8x14xf32>
    %68 = vector.extract_strided_slice %26 {offsets = [16, 0], sizes = [8, 1], strides = [1, 1]} : vector<32x1xf32> to vector<8x1xf32>
    %69 = vector.broadcast %68 : vector<8x1xf32> to vector<8x14xf32>
    %70 = arith.mulf %67, %69 : vector<8x14xf32>
    %71 = vector.extract_strided_slice %27 {offsets = [16, 0], sizes = [8, 1], strides = [1, 1]} : vector<32x1xf32> to vector<8x1xf32>
    %72 = vector.broadcast %71 : vector<8x1xf32> to vector<8x14xf32>
    %73 = arith.addf %70, %72 : vector<8x14xf32>
    %74 = vector.extract_strided_slice %25 {offsets = [24, 0], sizes = [8, 14], strides = [1, 1]} : vector<32x14xf32> to vector<8x14xf32>
    %cst_26 = arith.constant dense<0.000000e+00> : vector<14xf32>
    %75 = vector.multi_reduction <add>, %74, %cst_26 [0] : vector<8x14xf32> to vector<14xf32>
    %76 = vector.shape_cast %75 : vector<14xf32> to vector<1x14xf32>
    %cst_27 = arith.constant 1.250000e-01 : f32
    %77 = vector.broadcast %cst_27 : f32 to vector<1x14xf32>
    %78 = arith.mulf %76, %77 : vector<1x14xf32>
    %79 = vector.broadcast %78 : vector<1x14xf32> to vector<8x14xf32>
    %80 = arith.subf %74, %79 : vector<8x14xf32>
    %81 = arith.mulf %80, %80 : vector<8x14xf32>
    %cst_28 = arith.constant dense<0.000000e+00> : vector<14xf32>
    %82 = vector.multi_reduction <add>, %81, %cst_28 [0] : vector<8x14xf32> to vector<14xf32>
    %83 = vector.shape_cast %82 : vector<14xf32> to vector<1x14xf32>
    %cst_29 = arith.constant 1.250000e-01 : f32
    %84 = vector.broadcast %cst_29 : f32 to vector<1x14xf32>
    %85 = arith.mulf %83, %84 : vector<1x14xf32>
    %cst_30 = arith.constant 9.99999974E-6 : f32
    %86 = vector.broadcast %cst_30 : f32 to vector<1x14xf32>
    %87 = arith.addf %85, %86 : vector<1x14xf32>
    %88 = math.rsqrt %87 : vector<1x14xf32>
    %89 = vector.broadcast %88 : vector<1x14xf32> to vector<8x14xf32>
    %90 = arith.mulf %80, %89 : vector<8x14xf32>
    %91 = vector.extract_strided_slice %26 {offsets = [24, 0], sizes = [8, 1], strides = [1, 1]} : vector<32x1xf32> to vector<8x1xf32>
    %92 = vector.broadcast %91 : vector<8x1xf32> to vector<8x14xf32>
    %93 = arith.mulf %90, %92 : vector<8x14xf32>
    %94 = vector.extract_strided_slice %27 {offsets = [24, 0], sizes = [8, 1], strides = [1, 1]} : vector<32x1xf32> to vector<8x1xf32>
    %95 = vector.broadcast %94 : vector<8x1xf32> to vector<8x14xf32>
    %96 = arith.addf %93, %95 : vector<8x14xf32>
    %97 = tpu.concatenate %50, %73, %96 in 0 : vector<16x14xf32>, vector<8x14xf32>, vector<8x14xf32> -> vector<32x14xf32>
    %c0_31 = arith.constant 0 : index
    %c0_32 = arith.constant 0 : index
    %98 = vector.load %arg7[%c0_31, %c0_32] : memref<32x32xf32, #tpu.memory_space<vmem>>, vector<32x32xf32>
    %cst_33 = arith.constant dense<0.000000e+00> : vector<32x14xf32>
    %99 = tpu.matmul %98, %97, %cst_33 {dimension_numbers = #tpu.dot_dimension_numbers<[1], [0], [0], [1], [0, 0, 1, 1], [], []>} : vector<32x32xf32>, vector<32x14xf32>, vector<32x14xf32> -> vector<32x14xf32>
    %c0_34 = arith.constant 0 : index
    %c0_35 = arith.constant 0 : index
    %100 = vector.load %arg8[%c0_34, %c0_35] : memref<32x1xf32, #tpu.memory_space<vmem>>, vector<32x1xf32>
    %101 = vector.broadcast %100 : vector<32x1xf32> to vector<32x14xf32>
    %102 = arith.addf %99, %101 : vector<32x14xf32>
    %cst_36 = arith.constant 0.000000e+00 : f32
    %103 = vector.broadcast %cst_36 : f32 to vector<32x14xf32>
    %104 = arith.maximumf %102, %103 : vector<32x14xf32>
    %c0_37 = arith.constant 0 : index
    %c0_38 = arith.constant 0 : index
    %c0_39 = arith.constant 0 : index
    %105 = vector.load %arg9[%c0_37, %c0_38, %c0_39] : memref<1x32x14xf32, #tpu.memory_space<vmem>>, vector<1x32x14xf32>
    %106 = vector.shape_cast %105 : vector<1x32x14xf32> to vector<32x14xf32>
    %107 = vector.shape_cast %104 : vector<32x14xf32> to vector<1x32x14xf32>
    tpu.vector_store %arg9[%c0_37, %c0_38, %c0_39], %107 {strides = array<i32>} : memref<1x32x14xf32, #tpu.memory_space<vmem>>, vector<1x32x14xf32>,
    return
  }
  func.func @transform_0(%arg0: i32, %arg1: i32) -> (i32, i32, i32, i32) {
    %c0_i32 = arith.constant 0 : i32
    %c0_i32_0 = arith.constant 0 : i32
    %c0_i32_1 = arith.constant 0 : i32
    return %arg0, %arg1, %c0_i32, %c0_i32_0 : i32, i32, i32, i32
  }
  func.func @transform_1(%arg0: i32, %arg1: i32) -> (i32, i32) {
    %c0_i32 = arith.constant 0 : i32
    %c0_i32_0 = arith.constant 0 : i32
    %c0_i32_1 = arith.constant 0 : i32
    return %c0_i32, %c0_i32_0 : i32, i32
  }
  func.func @transform_2(%arg0: i32, %arg1: i32) -> (i32, i32) {
    %c0_i32 = arith.constant 0 : i32
    %c0_i32_0 = arith.constant 0 : i32
    %c0_i32_1 = arith.constant 0 : i32
    return %c0_i32, %c0_i32_0 : i32, i32
  }
  func.func @transform_3(%arg0: i32, %arg1: i32) -> (i32, i32) {
    %c0_i32 = arith.constant 0 : i32
    %c0_i32_0 = arith.constant 0 : i32
    %c0_i32_1 = arith.constant 0 : i32
    return %c0_i32, %c0_i32_0 : i32, i32
  }
  func.func @transform_4(%arg0: i32, %arg1: i32) -> (i32, i32) {
    %c0_i32 = arith.constant 0 : i32
    %c0_i32_0 = arith.constant 0 : i32
    %c0_i32_1 = arith.constant 0 : i32
    return %c0_i32, %c0_i32_0 : i32, i32
  }
  func.func @transform_5(%arg0: i32, %arg1: i32) -> (i32, i32) {
    %c0_i32 = arith.constant 0 : i32
    %c0_i32_0 = arith.constant 0 : i32
    %c0_i32_1 = arith.constant 0 : i32
    return %c0_i32, %c0_i32_0 : i32, i32
  }
  func.func @transform_6(%arg0: i32, %arg1: i32) -> (i32, i32) {
    %c0_i32 = arith.constant 0 : i32
    %c0_i32_0 = arith.constant 0 : i32
    %c0_i32_1 = arith.constant 0 : i32
    return %c0_i32, %c0_i32_0 : i32, i32
  }
  func.func @transform_7(%arg0: i32, %arg1: i32) -> (i32, i32, i32) {
    %c0_i32 = arith.constant 0 : i32
    %c0_i32_0 = arith.constant 0 : i32
    return %arg0, %c0_i32, %arg1 : i32, i32, i32
  }
}

</mosaic_0001>

<bundles_post_ra>
// kernel: tpu_custom_call.1
= control target key start
LH: loop header
LB: loop body
LE: loop exit
PB: predicated region body
PF: predicated region fallthrough
CT: control target
= control target key end

     0   :  { %s1611_s24 = smov 0   ;;  %s1613_s25 = smov 0   ;;  %s1772_s0 = inlined_call_operand.vmem [shape: f32[2,1,32,16], index: 0, kind: input, shape index: {}]   ;;  %s1773_s1 = inlined_call_operand.vmem [shape: f32[32,64], index: 1, kind: input, shape index: {}]   ;;  %s1774_s2 = inlined_call_operand.vmem [shape: f32[32,1], index: 2, kind: input, shape index: {}]   ;;  %s1775_s3 = inlined_call_operand.vmem [shape: f32[32,1], index: 3, kind: input, shape index: {}]   ;;  %s1776_s4 = inlined_call_operand.vmem [shape: f32[32,1], index: 4, kind: input, shape index: {}]   ;;  %s1777_s5 = inlined_call_operand.vmem [shape: f32[32,32], index: 5, kind: input, shape index: {}]   ;;  %s1778_s6 = inlined_call_operand.vmem [shape: f32[32,1], index: 6, kind: input, shape index: {}]   ;;  %s1779_s7 = inlined_call_operand.vmem [shape: f32[2,32,14], index: 7, kind: output, shape index: {}]  }
   0x1   :  { %s1615_s26 = smov 0  }
   0x2 LB: > { %s29_s27 = sadd.s32 1, %s1562_s25  ;;  %p1186_p0 = scmp.ge.s32.totalorder %s1566_s26, 1  ;;  %s1566_s26 = sphi %s1615_s26, %s17_s26   ;;  %s1562_s25 = sphi %s1613_s25, %s1781_s25   ;;  %s1558_s24 = sphi %s1611_s24, %s1780_s24  }
   0x3   : > { %p31_p1 = scmp.ge.s32.totalorder %s29_s27, 2  ;;  %p257_p2 = scmp.lt.s32.totalorder %s1566_s26, 3 }
   0x5   : > { %s1783_s27 = smov (%p31_p1, %s29_s27), 0  ;;  %p258_p3 = pnand %p1186_p0, %p257_p2 }
   0x6   : > { %p296_p4 = scmp.lt.s32.totalorder (!%p258_p3), %s1558_s24, 1  ;;  %vm349_vm0 = vcmask (!%p258_p3), 523264   ;;  %s1568_s9 = smov (!%p258_p3), 126   ;;  %v1640_v7 = vld [vmem:[%s1773_s1] sm:$0xff] (!%p258_p3)  ;;  %v804_v10 = vld [vmem:[%s1774_s2 + $0x8] sm:$0xff] (!%p258_p3)  ;;  %v1570_v12 = vmov (!%p258_p3), 0  }
   0x7   : > { %261 = sbr.rel (%p258_p3) target bundleno = 687 (0x2af), region = 48  ;;  %1303 = vmatprep.mubr.msk.f32.mxu0 (!%p258_p3), %vm349_vm0, %v1640_v7  ;;  %1325 = vmatprep.mubr.msk.f32.mxu1 (!%p258_p3), %vm349_vm0, %v1640_v7  ;;  %s1569_s12 = smov (!%p258_p3), 127   ;;  %v803_v11 = vld [vmem:[%s1774_s2] sm:$0xff] (!%p258_p3)  ;;  %v805_v13 = vld [vmem:[%s1774_s2 + $0x10] sm:$0xff] (!%p258_p3)  ;;  %v806_v14 = vld [vmem:[%s1774_s2 + $0x18] sm:$0xff] (!%p258_p3)  ;;  %vm990_vm1 = vcmask (!%p258_p3), 261120  }
   0x8   : > { %1537 = vset.pattern.permute.xlu1 (!%p258_p3), %v1570_v12  ;;  %1536 = vset.pattern.permute.xlu0 (!%p258_p3), %v1570_v12  ;;  %v835_v15 = vld [vmem:[%s1775_s3] sm:$0xff] (!%p258_p3)  ;;  %v836_v16 = vld [vmem:[%s1775_s3 + $0x8] sm:$0xff] (!%p258_p3)  ;;  %v837_v19 = vld [vmem:[%s1775_s3 + $0x10] sm:$0xff] (!%p258_p3)  ;;  %vm843_vm2 = vcmask (!%p258_p3), 113664  }
   0x9   : > { %v839_v17 = vld [vmem:[%s1776_s4] sm:$0xff] (!%p258_p3)  ;;  %v840_v18 = vld [vmem:[%s1776_s4 + $0x8] sm:$0xff] (!%p258_p3)  ;;  %v838_v20 = vld [vmem:[%s1775_s3 + $0x18] sm:$0xff] (!%p258_p3) }
   0xa   : > { %v841_v21 = vld [vmem:[%s1776_s4 + $0x10] sm:$0xff] (!%p258_p3)  ;;  %v842_v22 = vld [vmem:[%s1776_s4 + $0x18] sm:$0xff] (!%p258_p3)  ;;  %v966_v23 = vld [vmem:[%s1778_s6] sm:$0xff] (!%p258_p3) }
   0xb   : > { %v967_v24 = vld [vmem:[%s1778_s6 + $0x8] sm:$0xff] (!%p258_p3)  ;;  %v968_v25 = vld [vmem:[%s1778_s6 + $0x10] sm:$0xff] (!%p258_p3)  ;;  %v969_v26 = vld [vmem:[%s1778_s6 + $0x18] sm:$0xff] (!%p258_p3) }
   0xc   : > { %v346_v39 = vld [vmem:[%s1773_s1 + $0x8] sm:$0xff] (!%p258_p3)  ;;  %v347_v40 = vld [vmem:[%s1773_s1 + $0x10] sm:$0xff] (!%p258_p3)  ;;  %v348_v41 = vld [vmem:[%s1773_s1 + $0x18] sm:$0xff] (!%p258_p3) }
   0xd   : > { %v962_v48 = vld [vmem:[%s1777_s5] sm:$0xff] (!%p258_p3) }
   0xe   : > { %s1785_s24 = smov (!%p296_p4, %s1558_s24), 1 }
   0xf   : > { %s1217_s28 = sshll.u32 %s1785_s24, 5 }
  0x10   : > { %s304_s8 = scalar_lea.vmem %s1772_s0, %s1217_s28  ;;  %s312_s30 = scalar_lea.vmem %s1779_s7, %s1217_s28 }
  0x11   : > { %v313_v0 = vld [vmem:[%s304_s8] sm:$0xff]  ;;  %v314_v1 = vld [vmem:[%s304_s8 + $0x8] sm:$0xff]  ;;  %v315_v2 = vld [vmem:[%s304_s8 + $0x10] sm:$0xff] }
  0x12   : > { %v1526_v3 = vpack.i.bf16 %v314_v1, %v313_v0  ;;  %v316_v4 = vld [vmem:[%s304_s8 + $0x18] sm:$0xff]  ;;  %333 = vrot.lane.b32.xlu1 %v313_v0, %s1568_s9  ;;  %v1411_v5 = vpack.c.bf16 %v314_v1, %v313_v0  ;;  %v1427_v6 = vpack.c.bf16 %v315_v2, %v314_v1 }
  0x13   : > { %v1642_v8 = vpack.c.bf16 %v316_v4, %v315_v2  ;;  %v1531_v9 = vpack.i.bf16 %v316_v4, %v315_v2 }
  0x14   : > { %1527 = vrot.lane.b32.xlu0 %v1526_v3, %s1569_s12  ;;  %1412 = vmatprep.subr.bf16.mxu0 %v1411_v5 }
  0x15   : > { %1414 = vmatpush3.bf16.msra.mxu0 %v1411_v5  ;;  %1428 = vmatprep.subr.bf16.mxu1 %v1427_v6 }
  0x16   : > { %335 = vrot.lane.b32.xlu1 %v314_v1, %s1568_s9  ;;  %1416 = vmatprep.subr.bf16.mxu0 %v1642_v8 }
  0x17   : > { %1430 = vmatpush3.bf16.msra.mxu1 %v1427_v6 }
  0x18   : > { %1532 = vrot.lane.b32.xlu0 %v1531_v9, %s1569_s12 }
  0x19   : > { %1418 = vmatpush3.bf16.msra.mxu0 %v1642_v8 }
  0x1a   : > { %339 = vrot.lane.b32.xlu1 %v316_v4, %s1568_s9 }
  0x1c   : > { %337 = vrot.lane.b32.xlu0 %v315_v2, %s1568_s9 }
  0x1e   : > { %814 = vperm.xlu1 %1537, %v804_v10  }
  0x20   : > { %809 = vperm.xlu0 %1536, %v803_v11  }
  0x22   : > { %819 = vperm.xlu1 %1537, %v805_v13  }
  0x24   : > { %824 = vperm.xlu0 %1536, %v806_v14  }
  0x26   : > { %874 = vperm.xlu1 %1537, %v835_v15  }
  0x28   : > { %879 = vperm.xlu0 %1536, %v836_v16  }
  0x2a   : > { %886 = vperm.xlu1 %1537, %v839_v17  }
  0x2c   : > { %891 = vperm.xlu0 %1536, %v840_v18  }
  0x2e   : > { %919 = vperm.xlu1 %1537, %v837_v19  }
  0x30   : > { %952 = vperm.xlu0 %1536, %v838_v20  }
  0x32   : > { %925 = vperm.xlu1 %1537, %v841_v21  }
  0x34   : > { %958 = vperm.xlu0 %1536, %v842_v22  }
  0x36   : > { %972 = vperm.xlu1 %1537, %v966_v23  }
  0x38   : > { %977 = vperm.xlu0 %1536, %v967_v24  }
  0x3a   : > { %982 = vperm.xlu1 %1537, %v968_v25  }
  0x3c   : > { %987 = vperm.xlu0 %1536, %v969_v26  }
  0x84   : > { %v334_v35 = vpop.permute.xlu1 %333 }
  0x86   : > { %v1528_v27 = vpop.permute.xlu0 %1527 }
  0x87   : > { %v1530_v28 = vunpack.i.h.bf16 %v1528_v27  ;;  %v1529_v29 = vunpack.i.l.bf16 %v1528_v27 }
  0x88   : > { %v336_v42 = vpop.permute.xlu1 %335 }
  0x89   : > { %v1419_v30 = vpack.c.bf16 %v1530_v28, %v1529_v29  ;;  %v1431_v31 = vpack.c.bf16 %v1529_v29, %v316_v4  ;;  %v1455_v43 = vpack.c.bf16 %v336_v42, %v334_v35 }
  0x8a   : > { %v1533_v32 = vpop.permute.xlu0 %1532 }
  0x8b   : > { %v1535_v33 = vunpack.i.h.bf16 %v1533_v32  ;;  %v1534_v34 = vunpack.i.l.bf16 %v1533_v32  ;;  %1420 = vmatprep.subr.bf16.mxu0 %v1419_v30  ;;  %1432 = vmatprep.subr.bf16.mxu1 %v1431_v31 }
  0x8c   : > { %1422 = vmatpush3.bf16.msra.mxu0 %v1419_v30  ;;  %1434 = vmatpush3.bf16.msra.mxu1 %v1431_v31  ;;  %v340_v46 = vpop.permute.xlu1 %339 }
  0x8d   : > { %v1423_v36 = vpack.c.bf16 %v1535_v33, %v1534_v34  ;;  %v1435_v37 = vpack.c.bf16 %v1534_v34, %v1530_v28  ;;  %v1439_v38 = vpack.c.bf16 %v334_v35, %v1535_v33 }
  0x8e   : > { %v338_v44 = vpop.permute.xlu0 %337 }
  0x8f   : > { %1424 = vmatprep.subr.bf16.mxu0 %v1423_v36  ;;  %1436 = vmatprep.subr.bf16.mxu1 %v1435_v37  ;;  %v1471_v45 = vpack.c.bf16 %v338_v44, %v336_v42  ;;  %v1487_v47 = vpack.c.bf16 %v340_v46, %v338_v44 }
  0x90   : > { %1426 = vmatpush3.bf16.msra.mxu0 %v1423_v36  ;;  %1438 = vmatpush3.bf16.msra.mxu1 %v1435_v37 }
  0x91   : > { %1440 = vmatprep.subr.bf16.mxu1 %v1439_v38  ;;  %1444 = vmatprep.subr.bf16.mxu0 %v1642_v8 }
  0x93   : > { %1304 = vmatmul.mubr.msk.f32.vlgmr.msra.gmra.mrb[0].mxu0 %vm349_vm0, %v346_v39 }
  0x94   : > { %1442 = vmatpush3.bf16.msra.mxu1 %v1439_v38  ;;  %1446 = vmatpush3.bf16.msra.mxu0 %v1642_v8 }
  0x95   : > { %1448 = vmatprep.subr.bf16.mxu0 %v1419_v30  ;;  %1460 = vmatprep.subr.bf16.mxu1 %v1431_v31 }
  0x96   : > { %1306 = vmatprep.mubr.msk.f32.mxu0 %vm349_vm0, %v347_v40 }
  0x97   : > { %1326 = vmatmul.mubr.msk.f32.vlgmr.msra.gmra.mrb[0].mxu1 %vm349_vm0, %v346_v39  ;;  %1307 = vmatmul.mubr.msk.f32.gmra.mrb[2].mxu0 %vm349_vm0, %v348_v41 }
  0x98   : > { %1450 = vmatpush3.bf16.msra.mxu0 %v1419_v30  ;;  %1462 = vmatpush3.bf16.msra.mxu1 %v1431_v31 }
  0x99   : > { %1452 = vmatprep.subr.bf16.mxu0 %v1423_v36  ;;  %1464 = vmatprep.subr.bf16.mxu1 %v1435_v37 }
  0x9a   : > { %1328 = vmatprep.mubr.msk.f32.mxu1 %vm349_vm0, %v347_v40  ;;  %1347 = vmatprep.mubr.msk.f32.mxu0 %vm349_vm0, %v1640_v7 }
  0x9b   : > { %1329 = vmatmul.mubr.msk.f32.gmra.mrb[2].mxu1 %vm349_vm0, %v348_v41 }
  0x9c   : > { %1454 = vmatpush3.bf16.msra.mxu0 %v1423_v36  ;;  %1466 = vmatpush3.bf16.msra.mxu1 %v1435_v37 }
  0x9d   : > { %1456 = vmatprep.subr.bf16.mxu0 %v1455_v43  ;;  %1468 = vmatprep.subr.bf16.mxu1 %v1439_v38  ;;  %v815_v15 = vpop.permute.xlu1 %814 }
  0x9e   : > { %1369 = vmatprep.mubr.msk.f32.mxu1 %vm349_vm0, %v1640_v7 }
  0x9f   : > { %v810_v13 = vpop.permute.xlu0 %809 }
  0xa0   : > { %1458 = vmatpush3.bf16.msra.mxu0 %v1455_v43  ;;  %1470 = vmatpush3.bf16.msra.mxu1 %v1439_v38 }
  0xa1   : > { %1472 = vmatprep.subr.bf16.mxu1 %v1471_v45  ;;  %1476 = vmatprep.subr.bf16.mxu0 %v1419_v30  ;;  %v820_v28 = vpop.permute.xlu1 %819 }
  0xa3   : > { %1348 = vmatmul.mubr.msk.f32.vlgmr.msra.gmra.mrb[4].mxu0 %vm349_vm0, %v346_v39  ;;  %v825_v25 = vpop.permute.xlu0 %824 }
  0xa4   : > { %1474 = vmatpush3.bf16.msra.mxu1 %v1471_v45  ;;  %1478 = vmatpush3.bf16.msra.mxu0 %v1419_v30 }
  0xa5   : > { %1480 = vmatprep.subr.bf16.mxu0 %v1423_v36  ;;  %1350 = vmatprep.mubr.msk.f32.mxu0 %vm349_vm0, %v347_v40 }
  0xa7   : > { %1351 = vmatmul.mubr.msk.f32.gmra.mrb[6].mxu0 %vm349_vm0, %v348_v41  ;;  %1370 = vmatmul.mubr.msk.f32.vlgmr.msra.gmra.mrb[4].mxu1 %vm349_vm0, %v346_v39 }
  0xa8   : > { %1482 = vmatpush3.bf16.msra.mxu0 %v1423_v36  ;;  %1372 = vmatprep.mubr.msk.f32.mxu1 %vm349_vm0, %v347_v40 }
  0xa9   : > { %1484 = vmatprep.subr.bf16.mxu0 %v1455_v43  ;;  %1391 = vmatprep.mubr.msk.f32.mxu0 %vm349_vm0, %v1640_v7 }
  0xab   : > { %1373 = vmatmul.mubr.msk.f32.gmra.mrb[6].mxu1 %vm349_vm0, %v348_v41 }
  0xac   : > { %1486 = vmatpush3.bf16.msra.mxu0 %v1455_v43  ;;  %1405 = vmatprep.mubr.msk.f32.mxu1 %vm990_vm1, %v962_v48 }
  0xad   : > { %1488 = vmatprep.subr.bf16.mxu0 %v1487_v47 }
  0xb0   : > { %1490 = vmatpush3.bf16.msra.mxu0 %v1487_v47 }
  0xb3   : > { %1392 = vmatmul.mubr.msk.f32.vlgmr.msra.gmra.mrb[8].mxu0 %vm349_vm0, %v346_v39 }
  0xb4   : > { %1394 = vmatprep.mubr.msk.f32.mxu0 %vm349_vm0, %v347_v40 }
  0xb7   : > { %1395 = vmatmul.mubr.msk.f32.gmra.mrb[10].mxu0 %vm349_vm0, %v348_v41 }
 0x166   : > { %v1305_v49 = vpop.f32.mrb[0].mxu0 }
 0x167   : > { %v428_v50 = vpop.f32.mrb[1].mxu0 }
 0x16a   : > { %v1327_v51 = vpop.f32.mrb[0].mxu1  ;;  %v1308_v52 = vpop.f32.mrb[2].mxu0 }
 0x16b   : > { %v533_v53 = vmax.f32 %v1305_v49, %v1327_v51  ;;  %v513_v54 = vpop.f32.mrb[1].mxu1  ;;  %v438_v55 = vpop.f32.mrb[3].mxu0 }
 0x16c   : > { %v532_v56 = vmax.f32 %v428_v50, %v513_v54 }
 0x16e   : > { %v1330_v57 = vpop.f32.mrb[2].mxu1 }
 0x16f   : > { %v535_v58 = vmax.f32 %v1308_v52, %v1330_v57  ;;  %v523_v59 = vpop.f32.mrb[3].mxu1 }
 0x170   : > { %v534_v60 = vmax.f32 %v438_v55, %v523_v59 }
 0x176   : > { %v1349_v61 = vpop.f32.mrb[4].mxu0 }
 0x177   : > { %v622_v62 = vmax.f32 %v533_v53, %v1349_v61  ;;  %v602_v63 = vpop.f32.mrb[5].mxu0 }
 0x178   : > { %v621_v0 = vmax.f32 %v532_v56, %v602_v63 }
 0x17a   : > { %v1352_v1 = vpop.f32.mrb[6].mxu0  ;;  %v1371_v2 = vpop.f32.mrb[4].mxu1 }
 0x17b   : > { %v624_v3 = vmax.f32 %v535_v58, %v1352_v1  ;;  %v711_v4 = vmax.f32 %v622_v62, %v1371_v2  ;;  %v612_v5 = vpop.f32.mrb[7].mxu0  ;;  %v691_v6 = vpop.f32.mrb[5].mxu1 }
 0x17c   : > { %v623_v7 = vmax.f32 %v534_v60, %v612_v5  ;;  %v710_v8 = vmax.f32 %v621_v0, %v691_v6 }
 0x17e   : > { %v1374_v9 = vpop.f32.mrb[6].mxu1 }
 0x17f   : > { %v713_v10 = vmax.f32 %v624_v3, %v1374_v9  ;;  %v701_v11 = vpop.f32.mrb[7].mxu1 }
 0x180   : > { %v712_v12 = vmax.f32 %v623_v7, %v701_v11 }
 0x186   : > { %v1393_v14 = vpop.f32.mrb[8].mxu0 }
 0x187   : > { %v800_v16 = vmax.f32 %v711_v4, %v1393_v14  ;;  %v780_v17 = vpop.f32.mrb[9].mxu0 }
 0x188   : > { %v799_v18 = vmax.f32 %v710_v8, %v780_v17 }
 0x189   : > { %v828_v19 = vadd.f32 %v815_v15, %v800_v16 }
 0x18a   : > { %v827_v20 = vadd.f32 %v810_v13, %v799_v18  ;;  %v1396_v21 = vpop.f32.mrb[10].mxu0 }
 0x18b   : > { %v832_v22 = vmax.f32 %v828_v19, 0.0  ;;  %v802_v23 = vmax.f32 %v713_v10, %v1396_v21  ;;  %v790_v24 = vpop.f32.mrb[11].mxu0 }
 0x18c   : > { %v831_v26 = vmax.f32 %v827_v20, 0.0  ;;  %v801_v27 = vmax.f32 %v712_v12, %v790_v24 }
 0x18d   : > { %v845_v29 = vsel %vm843_vm2, %v832_v22, 0.0  ;;  %v830_v30 = vadd.f32 %v825_v25, %v802_v23 }
 0x18e   : > { %v844_v31 = vsel %vm843_vm2, %v831_v26, 0.0  ;;  %v829_v32 = vadd.f32 %v820_v28, %v801_v27 }
 0x18f   : > { %v846_v33 = vadd.f32 %v845_v29, %v844_v31  ;;  %v834_v34 = vmax.f32 %v830_v30, 0.0  ;;  %v875_v30 = vpop.permute.xlu1 %874 }
 0x190   : > { %v833_v35 = vmax.f32 %v829_v32, 0.0 }
 0x191   : > { %v847_v36 = vrot.slane %v846_v33, 4  ;;  %v929_v37 = vsel %vm843_vm2, %v834_v34, 0.0 }
 0x192   : > { %v930_v38 = vrot.slane %v929_v37, 4  ;;  %v896_v39 = vsel %vm843_vm2, %v833_v35, 0.0 }
 0x193   : > { %v848_v40 = vadd.f32 %v847_v36, %v846_v33  ;;  %v897_v41 = vrot.slane %v896_v39, 4 }
 0x194   : > { %v931_v42 = vadd.f32 %v930_v38, %v929_v37 }
 0x195   : > { %v849_v43 = vrot.slane %v848_v40, 2  ;;  %v898_v44 = vadd.f32 %v897_v41, %v896_v39 }
 0x196   : > { %v932_v45 = vrot.slane %v931_v42, 2 }
 0x197   : > { %v850_v46 = vadd.f32 %v849_v43, %v848_v40  ;;  %v899_v47 = vrot.slane %v898_v44, 2 }
 0x198   : > { %v933_v48 = vadd.f32 %v932_v45, %v931_v42 }
 0x199   : > { %v851_v49 = vrot.slane %v850_v46, 1  ;;  %v900_v50 = vadd.f32 %v899_v47, %v898_v44 }
 0x19a   : > { %v934_v51 = vrot.slane %v933_v48, 1 }
 0x19b   : > { %v852_v52 = vadd.f32 %v851_v49, %v850_v46  ;;  %v901_v53 = vrot.slane %v900_v50, 1 }
 0x19c   : > { %v935_v54 = vadd.f32 %v934_v51, %v933_v48 }
 0x19d   : > { %v853_v55 = vmul.f32 0.0625, %v852_v52  ;;  %v902_v56 = vadd.f32 %v901_v53, %v900_v50 }
 0x19e   : > { %v936_v57 = vmul.f32 0.125, %v935_v54 }
 0x19f   : > { %v854_v58 = vsub.f32 %v831_v26, %v853_v55  ;;  %v855_v59 = vsub.f32 %v832_v22, %v853_v55  ;;  %v903_v60 = vmul.f32 0.125, %v902_v56  ;;  %v880_v26 = vpop.permute.xlu0 %879 }
 0x1a0   : > { %v937_v61 = vsub.f32 %v834_v34, %v936_v57  ;;  %v963_v57 = vld [vmem:[%s1777_s5 + $0x8] sm:$0xff] }
 0x1a1   : > { %v856_v62 = vmul.f32 %v854_v58, %v854_v58  ;;  %v857_v63 = vmul.f32 %v855_v59, %v855_v59  ;;  %v904_v0 = vsub.f32 %v833_v35, %v903_v60  ;;  %v887_v35 = vpop.permute.xlu1 %886 }
 0x1a2   : > { %v938_v1 = vmul.f32 %v937_v61, %v937_v61 }
 0x1a3   : > { %v858_v2 = vsel %vm843_vm2, %v856_v62, 0.0  ;;  %v859_v3 = vsel %vm843_vm2, %v857_v63, 0.0  ;;  %v905_v4 = vmul.f32 %v904_v0, %v904_v0  ;;  %v892_v34 = vpop.permute.xlu0 %891 }
 0x1a4   : > { %v860_v5 = vadd.f32 %v859_v3, %v858_v2  ;;  %v939_v6 = vsel %vm843_vm2, %v938_v1, 0.0 }
 0x1a5   : > { %v940_v7 = vrot.slane %v939_v6, 4  ;;  %v906_v8 = vsel %vm843_vm2, %v905_v4, 0.0  ;;  %v920_v38 = vpop.permute.xlu1 %919 }
 0x1a6   : > { %v861_v9 = vrot.slane %v860_v5, 4  ;;  %v907_v10 = vrot.slane %v906_v8, 4 }
 0x1a7   : > { %v941_v11 = vadd.f32 %v940_v7, %v939_v6  ;;  %v953_v36 = vpop.permute.xlu0 %952 }
 0x1a8   : > { %v862_v12 = vadd.f32 %v861_v9, %v860_v5  ;;  %v908_v13 = vadd.f32 %v907_v10, %v906_v8 }
 0x1a9   : > { %v942_v14 = vrot.slane %v941_v11, 2  ;;  %v926_v51 = vpop.permute.xlu1 %925 }
 0x1aa   : > { %v863_v15 = vrot.slane %v862_v12, 2  ;;  %v909_v16 = vrot.slane %v908_v13, 2 }
 0x1ab   : > { %v943_v17 = vadd.f32 %v942_v14, %v941_v11  ;;  %v959_v46 = vpop.permute.xlu0 %958 }
 0x1ac   : > { %v864_v18 = vadd.f32 %v863_v15, %v862_v12  ;;  %v910_v19 = vadd.f32 %v909_v16, %v908_v13 }
 0x1ad   : > { %v944_v20 = vrot.slane %v943_v17, 1 }
 0x1ae   : > { %v865_v21 = vrot.slane %v864_v18, 1  ;;  %v911_v22 = vrot.slane %v910_v19, 1 }
 0x1af   : > { %v945_v23 = vadd.f32 %v944_v20, %v943_v17  ;;  %v978_v60 = vpop.permute.xlu0 %977 }
 0x1b0   : > { %v866_v24 = vadd.f32 %v865_v21, %v864_v18  ;;  %v912_v25 = vadd.f32 %v911_v22, %v910_v19 }
 0x1b1   : > { %v946_v27 = vmul.f32 0.125, %v945_v23 }
 0x1b2   : > { %v867_v28 = vmul.f32 0.0625, %v866_v24  ;;  %v913_v29 = vmul.f32 0.125, %v912_v25 }
 0x1b3   : > { %v947_v31 = vadd.f32 1e-05, %v946_v27  ;;  %v988_v3 = vpop.permute.xlu0 %987 }
 0x1b4   : > { %v868_v32 = vadd.f32 1e-05, %v867_v28  ;;  %v914_v33 = vadd.f32 1e-05, %v913_v29 }
 0x1b5   : > { %1538 = vrsqrt.f32 %v947_v31 }
 0x1b6   : > { %1540 = vrsqrt.f32 %v868_v32 }
 0x1b7   : > { %1542 = vrsqrt.f32 %v914_v33 }
 0x1bf   : > { %v1539_v37 = vpop.eup %1538 }
 0x1c0   : > { %v1541_v39 = vpop.eup %1540  ;;  %v949_v40 = vmul.f32 %v1539_v37, %v937_v61  ;;  %v973_v61 = vpop.permute.xlu1 %972 }
 0x1c1   : > { %v1543_v41 = vpop.eup %1542  ;;  %v870_v42 = vmul.f32 %v1541_v39, %v854_v58  ;;  %v871_v43 = vmul.f32 %v1541_v39, %v855_v59  ;;  %v964_v58 = vld [vmem:[%s1777_s5 + $0x10] sm:$0xff]  ;;  %v965_v59 = vld [vmem:[%s1777_s5 + $0x18] sm:$0xff] }
 0x1c2   : > { %v916_v44 = vmul.f32 %v1543_v41, %v904_v0  ;;  %v955_v45 = vmul.f32 %v953_v36, %v949_v40 }
 0x1c3   : > { %v882_v47 = vmul.f32 %v875_v30, %v870_v42  ;;  %v883_v48 = vmul.f32 %v880_v26, %v871_v43 }
 0x1c4   : > { %v922_v49 = vmul.f32 %v920_v38, %v916_v44  ;;  %v961_v50 = vadd.f32 %v959_v46, %v955_v45  ;;  %v983_v6 = vpop.permute.xlu1 %982 }
 0x1c5   : > { %v894_v52 = vadd.f32 %v887_v35, %v882_v47  ;;  %v895_v53 = vadd.f32 %v892_v34, %v883_v48 }
 0x1c6   : > { %v928_v54 = vadd.f32 %v926_v51, %v922_v49 }
 0x1c7   : > { %v1491_v55 = vpack.c.bf16 %v895_v53, %v894_v52 }
 0x1c8   : > { %v1495_v56 = vpack.c.bf16 %v961_v50, %v928_v54 }
 0x1c9   : > { %1492 = vmatprep.subr.bf16.mxu1 %v1491_v55 }
 0x1ca   : > { %1494 = vmatpush3.bf16.msra.mxu1 %v1491_v55 }
 0x1cb   : > { %1496 = vmatprep.subr.bf16.mxu1 %v1495_v56 }
 0x1ce   : > { %1498 = vmatpush3.bf16.msra.mxu1 %v1495_v56 }
 0x1d1   : > { %1406 = vmatmul.mubr.msk.f32.vlgmr.msra.gmra.mrb[8].mxu1 %vm990_vm1, %v963_v57 }
 0x1d2   : > { %1408 = vmatprep.mubr.msk.f32.mxu1 %vm990_vm1, %v964_v58 }
 0x1d5   : > { %1409 = vmatmul.mubr.msk.f32.gmra.mrb[10].mxu1 %vm990_vm1, %v965_v59 }
 0x2a4   : > { %v1407_v62 = vpop.f32.mrb[8].mxu1 }
 0x2a5   : > { %v1075_v63 = vadd.f32 %v1407_v62, %v978_v60  ;;  %v1069_v0 = vpop.f32.mrb[9].mxu1 }
 0x2a6   : > { %v1070_v1 = vadd.f32 %v1069_v0, %v973_v61 }
 0x2a7   : > { %v1089_v2 = vmax.f32 %v1075_v63, 0.0 }
 0x2a8   : > { %v1088_v4 = vmax.f32 %v1070_v1, 0.0  ;;  %v1410_v5 = vpop.f32.mrb[10].mxu1 }
 0x2a9   : > { %1093 = vst.msk [vmem:[%s312_s30 + $0x8] sm:$0xff] %vm843_vm2, %v1089_v2  ;;  %v1085_v7 = vadd.f32 %v1410_v5, %v988_v3  ;;  %v1079_v8 = vpop.f32.mrb[11].mxu1 }
 0x2aa   : > { %1092 = vst.msk [vmem:[%s312_s30] sm:$0xff] %vm843_vm2, %v1088_v4  ;;  %v1080_v9 = vadd.f32 %v1079_v8, %v983_v6 }
 0x2ab   : > { %v1091_v10 = vmax.f32 %v1085_v7, 0.0 }
 0x2ac   : > { %v1090_v11 = vmax.f32 %v1080_v9, 0.0 }
 0x2ad   : > { %1095 = vst.msk [vmem:[%s312_s30 + $0x18] sm:$0xff] %vm843_vm2, %v1091_v10 }
 0x2ae   : > { %1094 = vst.msk [vmem:[%s312_s30 + $0x10] sm:$0xff] %vm843_vm2, %v1090_v11 }
 0x2af PF: > { %s17_s26 = sadd.s32 1, %s1566_s26   ;;  %s1780_s24 = smov %s1562_s25 }
 0x2b0   : > { %p14_p5 = scmp.ge.s32.totalorder %s17_s26, 4   ;;  %s1781_s25 = smov %s1783_s27 }
 0x2b2   :  { %16 = sbr.rel (!%p14_p5) target bundleno = 2 (0x2), region = 78 }

</bundles_post_ra>
